<compile_context>
chip_gen: v7x
topology: tpu7x:2x2x1
jax: 0.10.0
libtpu: 0.0.40
codegen_flags: <defaults>
</compile_context>

<pallas_src>
import functools

import jax
import jax.numpy as jnp
import numpy as np
from jax import lax
from jax.experimental import pallas as pl
from jax.experimental.pallas import tpu as pltpu

KH = KW = 3  # kernel_size=3, stride=1, padding=1 ("same")


def _pick_batch_block(B, C_pad, N, col_budget_bytes=6 << 20):
    """How many batch images to fold into the lane dim per grid step."""
    if N % 128 != 0:          # lane-concat of batch slices must stay tile-aligned
        return 1
    per_batch = 9 * C_pad * N * 4            # f32 im2col slab per image
    bblk = max(1, col_budget_bytes // per_batch)
    if B > 1:
        # Keep >= 2 "parallel" grid steps so both v7x TensorCores get work.
        bblk = min(bblk, max(1, B // 2))
    bblk = max(1, min(bblk, B))
    while B % bblk:
        bblk -= 1
    return int(bblk)


def _coordconv_kernel(x_ref, w_ref, bmap_ref, mask_ref, o_ref, *,
                      C, C_pad, H, W, bblk, compute_dtype, relu):
    # x_ref:    (bblk, C, H*W)      batch block, channels-major, spatial flat
    # w_ref:    (Cout, 9*C_pad)     im2col weights for the DATA channels only
    # bmap_ref: (Cout, bblk*H*W)    bias + coord-channel conv contribution (f32)
    # mask_ref: (8, bblk*H*W)       per-tap boundary masks (f32, {0,1}), resident
    # o_ref:    (bblk, Cout, H*W)   lane-dense output
    N = H * W
    L = bblk * N

    # Fold the batch block into the lane dim: (C, bblk*N).  Lane concat offsets
    # are multiples of N (multiple of 128) -> pure tile placement, no relayout.
    if bblk == 1:
        xall = x_ref[0].astype(jnp.float32)
    else:
        xall = jnp.concatenate(
            [x_ref[b].astype(jnp.float32) for b in range(bblk)], axis=1)
    if C_pad > C:  # sublane-align the per-tap chunk (no-op for C = 16)
        xall = jnp.concatenate(
            [xall, jnp.zeros((C_pad - C, L), jnp.float32)], axis=0)

    # im2col via static lane rolls; precomputed masks zero out both the image
    # border ('same' padding) and the batch seams inside the folded lane axis.
    cols = []
    m = 0
    for di in range(KH):
        for dj in range(KW):
            ddi, ddj = di - 1, dj - 1
            shift = ddi * W + ddj
            if shift == 0:
                tap = xall
            else:
                tap = jnp.roll(xall, -shift, axis=1) * mask_ref[m:m + 1, :]
                m += 1
            cols.append(tap)
    col = jnp.concatenate(cols, axis=0)            # (9*C_pad, L), f32, aligned

    # Single MXU matmul (f32 accumulate); bias map + ReLU stay in f32.
    acc = jnp.dot(w_ref[...], col.astype(compute_dtype),
                  preferred_element_type=jnp.float32)   # (Cout, L)
    acc = acc + bmap_ref[...]
    if relu:
        acc = jnp.maximum(acc, 0.0)
    out = acc.astype(o_ref.dtype)
    for b in range(bblk):                          # aligned lane slices of 256
        o_ref[b] = out[:, b * N:(b + 1) * N]


def coord_conv_th(x_nchw, weight_oihw, bias, x_dim, y_dim, *, with_r=False,
                  relu=True, compute_dtype=jnp.float32):
    """Forward of CoordConvTh(x_dim, y_dim, with_r, kernel_size=3, stride=1, relu=True)."""
    if with_r:
        # TODO(synk): with_r=True yields x_dim+3 channels but the module's own
        # Conv2d expects x_dim+2 inputs, so the reference module would error too.
        raise NotImplementedError("with_r=True is inconsistent in the reference module")
    B, C, H, W = x_nchw.shape
    Cout, Cin, kh, kw = weight_oihw.shape
    assert (kh, kw) == (KH, KW)
    assert (H, W) == (x_dim, y_dim)
    assert Cin == C + 2, "Conv2d expects x_dim + 2 input channels (input + xx + yy)"
    N = H * W

    sub = 8 if compute_dtype == jnp.float32 else 16
    C_pad = ((C + sub - 1) // sub) * sub
    bblk = _pick_batch_block(B, C_pad, N)
    L = bblk * N

    # ---- constant lane tables (batch-independent, computed once per call) ----
    n = jnp.arange(N, dtype=jnp.int32)
    h_idx, w_idx = n // W, n % W
    mask_rows = []
    for di in range(KH):
        for dj in range(KW):
            ddi, ddj = di - 1, dj - 1
            if ddi == 0 and ddj == 0:
                continue
            ok = ((h_idx + ddi >= 0) & (h_idx + ddi < H) &
                  (w_idx + ddj >= 0) & (w_idx + ddj < W))
            mask_rows.append(ok.astype(jnp.float32))
    masks = jnp.tile(jnp.stack(mask_rows, axis=0), (1, bblk))      # (8, L)

    # AddCoordsTh channels (xx varies along H/x_dim, yy along W/y_dim); their
    # conv contribution is a constant (Cout, N) map -> fold into the bias.
    xx = jnp.broadcast_to(
        (jnp.arange(H, dtype=jnp.float32)[:, None] / (H - 1)) * 2.0 - 1.0, (H, W))
    yy = jnp.broadcast_to(
        (jnp.arange(W, dtype=jnp.float32)[None, :] / (W - 1)) * 2.0 - 1.0, (H, W))
    coords = jnp.stack([xx, yy], axis=0)[None]                      # (1, 2, H, W)
    coord_map = lax.conv_general_dilated(
        coords, weight_oihw[:, C:, :, :].astype(jnp.float32),
        window_strides=(1, 1), padding="SAME",
        dimension_numbers=("NCHW", "OIHW", "NCHW"))[0].reshape(Cout, N)
    bias_map = jnp.tile(coord_map + bias.astype(jnp.float32)[:, None], (1, bblk))

    # im2col weights for the data channels only (tap-major, channel-minor).
    w_in = jnp.transpose(weight_oihw[:, :C], (0, 2, 3, 1))          # (Cout,3,3,C)
    if C_pad > C:
        w_in = jnp.pad(w_in, ((0, 0), (0, 0), (0, 0), (0, C_pad - C)))
    w_mat = w_in.reshape(Cout, KH * KW * C_pad).astype(compute_dtype)

    # Zero-cost layout prep: contiguous trailing-dim merge (bitcast, no HBM pass).
    xf = x_nchw.reshape(B, C, N)

    kernel = functools.partial(_coordconv_kernel, C=C, C_pad=C_pad, H=H, W=W,
                               bblk=bblk, compute_dtype=compute_dtype, relu=relu)
    flops = 2 * B * N * KH * KW * C_pad * Cout
    bytes_accessed = int(xf.size * xf.dtype.itemsize
                         + w_mat.size * w_mat.dtype.itemsize
                         + bias_map.size * 4 + masks.size * 4
                         + B * Cout * N * x_nchw.dtype.itemsize)

    out_flat = pl.pallas_call(
        kernel,
        out_shape=jax.ShapeDtypeStruct((B, Cout, N), x_nchw.dtype),
        grid=(B // bblk,),
        in_specs=[
            pl.BlockSpec((bblk, C, N), lambda g: (g, 0, 0)),
            pl.BlockSpec((Cout, KH * KW * C_pad), lambda g: (0, 0)),  # resident
            pl.BlockSpec((Cout, L), lambda g: (0, 0)),                # resident
            pl.BlockSpec((8, L), lambda g: (0, 0)),                   # resident
        ],
        out_specs=pl.BlockSpec((bblk, Cout, N), lambda g: (g, 0, 0)),
        compiler_params=pltpu.CompilerParams(
            dimension_semantics=("parallel",)),
        cost_estimate=pl.CostEstimate(flops=flops, transcendentals=0,
                                      bytes_accessed=bytes_accessed),
    )(xf, w_mat, bias_map, masks)

    return out_flat.reshape(B, Cout, H, W)   # trailing-dim split: free


def add_coords_ref(x_nchw, x_dim, y_dim):
    """Pure-JAX AddCoordsTh (test reference): xx varies along H, yy along W."""
    B, _, H, W = x_nchw.shape
    xx = lax.broadcasted_iota(jnp.float32, (1, 1, H, W), 2)
    yy = lax.broadcasted_iota(jnp.float32, (1, 1, H, W), 3)
    xx = xx / (x_dim - 1) * 2.0 - 1.0
    yy = yy / (y_dim - 1) * 2.0 - 1.0
    xx = jnp.broadcast_to(xx, (B, 1, H, W))
    yy = jnp.broadcast_to(yy, (B, 1, H, W))
    return jnp.concatenate([x_nchw, xx, yy], axis=1)


if __name__ == "__main__":
    # CoordConvTh couples channel count to x_dim: Conv2d(x_dim + 2, y_dim, 3),
    # so the input is (B, x_dim, x_dim, y_dim).  B=4 exercises the batch-folding
    # path (2 images per grid step, 2 parallel grid steps).
    x_dim = y_dim = 16
    B = 4
    C = x_dim
    Cin = C + 2
    Cout = y_dim

    key = jax.random.PRNGKey(0)
    kx, kw_key, kb_key = jax.random.split(key, 3)
    x = jax.random.normal(kx, (B, C, x_dim, y_dim), dtype=jnp.float32)

    # Deterministic synthetic Conv2d params (PyTorch OIHW layout).
    fan_in = Cin * KH * KW
    bound = 1.0 / np.sqrt(fan_in)
    weight = jax.random.uniform(kw_key, (Cout, Cin, KH, KW), jnp.float32, -bound, bound)
    bias = jax.random.uniform(kb_key, (Cout,), jnp.float32, -bound, bound)

    fwd = jax.jit(lambda a, w, b: coord_conv_th(a, w, b, x_dim, y_dim))
    out = jax.block_until_ready(fwd(x, weight, bias))

    # Pure-JAX reference (AddCoordsTh + lax conv + bias + ReLU).
    ref_in = add_coords_ref(x, x_dim, y_dim)
    ref = lax.conv_general_dilated(
        ref_in, weight, window_strides=(1, 1), padding="SAME",
        dimension_numbers=("NCHW", "OIHW", "NCHW"))
    ref = jnp.maximum(ref + bias[None, :, None, None], 0.0)
    np.testing.assert_allclose(np.asarray(out), np.asarray(ref), rtol=1e-4, atol=2e-4)

    # bf16 MXU-operand path: data channels bf16, coord/bias map stays f32.
    fwd_bf16 = jax.jit(lambda a, w, b: coord_conv_th(
        a, w, b, x_dim, y_dim, compute_dtype=jnp.bfloat16))
    out_bf16 = jax.block_until_ready(fwd_bf16(x, weight, bias))
    np.testing.assert_allclose(np.asarray(out_bf16), np.asarray(ref), rtol=5e-2, atol=5e-2)

    print("KERNEL_OK")
</pallas_src>

<mosaic_0001>
module attributes {stable_mosaic.version = 11 : i64} {
  func.func @_coordconv_kernel(%arg0: i32, %arg1: memref<2x16x256xf32, #tpu.memory_space<vmem>>, %arg2: memref<16x144xf32, #tpu.memory_space<vmem>>, %arg3: memref<16x512xf32, #tpu.memory_space<vmem>>, %arg4: memref<8x512xf32, #tpu.memory_space<vmem>>, %arg5: memref<2x16x256xf32, #tpu.memory_space<vmem>>) attributes {dimension_semantics = [#tpu.dimension_semantics<parallel>], iteration_bounds = array<i64: 2>, scalar_prefetch = 0 : i64, scratch_operands = 0 : i64, tpu.core_type = #tpu.core_type<tc>, window_params = [{transform_indices = @transform_0, window_bounds = array<i64: 2, 16, 256>}, {pipeline_mode = #tpu.pipeline_mode<synchronous>, transform_indices = @transform_1, window_bounds = array<i64: 16, 144>}, {pipeline_mode = #tpu.pipeline_mode<synchronous>, transform_indices = @transform_2, window_bounds = array<i64: 16, 512>}, {pipeline_mode = #tpu.pipeline_mode<synchronous>, transform_indices = @transform_3, window_bounds = array<i64: 8, 512>}, {transform_indices = @transform_4, window_bounds = array<i64: 2, 16, 256>}]} {
    %c0 = arith.constant 0 : index
    %c0_0 = arith.constant 0 : index
    %c0_1 = arith.constant 0 : index
    %0 = vector.load %arg1[%c0, %c0_0, %c0_1] : memref<2x16x256xf32, #tpu.memory_space<vmem>>, vector<1x16x256xf32>
    %1 = vector.shape_cast %0 : vector<1x16x256xf32> to vector<16x256xf32>
    %c1 = arith.constant 1 : index
    %c0_2 = arith.constant 0 : index
    %c0_3 = arith.constant 0 : index
    %2 = vector.load %arg1[%c1, %c0_2, %c0_3] : memref<2x16x256xf32, #tpu.memory_space<vmem>>, vector<1x16x256xf32>
    %3 = vector.shape_cast %2 : vector<1x16x256xf32> to vector<16x256xf32>
    %4 = tpu.concatenate %1, %3 in 1 : vector<16x256xf32>, vector<16x256xf32> -> vector<16x512xf32>
    %5 = vector.extract_strided_slice %4 {offsets = [0, 495], sizes = [16, 17], strides = [1, 1]} : vector<16x512xf32> to vector<16x17xf32>
    %6 = vector.extract_strided_slice %4 {offsets = [0, 0], sizes = [16, 495], strides = [1, 1]} : vector<16x512xf32> to vector<16x495xf32>
    %7 = tpu.concatenate %5, %6 in 1 : vector<16x17xf32>, vector<16x495xf32> -> vector<16x512xf32>
    %c0_4 = arith.constant 0 : index
    %c0_5 = arith.constant 0 : index
    %8 = vector.load %arg4[%c0_4, %c0_5] : memref<8x512xf32, #tpu.memory_space<vmem>>, vector<1x512xf32>
    %9 = vector.broadcast %8 : vector<1x512xf32> to vector<16x512xf32>
    %10 = arith.mulf %7, %9 : vector<16x512xf32>
    %11 = vector.extract_strided_slice %4 {offsets = [0, 496], sizes = [16, 16], strides = [1, 1]} : vector<16x512xf32> to vector<16x16xf32>
    %12 = vector.extract_strided_slice %4 {offsets = [0, 0], sizes = [16, 496], strides = [1, 1]} : vector<16x512xf32> to vector<16x496xf32>
    %13 = tpu.concatenate %11, %12 in 1 : vector<16x16xf32>, vector<16x496xf32> -> vector<16x512xf32>
    %c1_6 = arith.constant 1 : index
    %c0_7 = arith.constant 0 : index
    %14 = vector.load %arg4[%c1_6, %c0_7] : memref<8x512xf32, #tpu.memory_space<vmem>>, vector<1x512xf32>
    %15 = vector.broadcast %14 : vector<1x512xf32> to vector<16x512xf32>
    %16 = arith.mulf %13, %15 : vector<16x512xf32>
    %17 = vector.extract_strided_slice %4 {offsets = [0, 497], sizes = [16, 15], strides = [1, 1]} : vector<16x512xf32> to vector<16x15xf32>
    %18 = vector.extract_strided_slice %4 {offsets = [0, 0], sizes = [16, 497], strides = [1, 1]} : vector<16x512xf32> to vector<16x497xf32>
    %19 = tpu.concatenate %17, %18 in 1 : vector<16x15xf32>, vector<16x497xf32> -> vector<16x512xf32>
    %c2 = arith.constant 2 : index
    %c0_8 = arith.constant 0 : index
    %20 = vector.load %arg4[%c2, %c0_8] : memref<8x512xf32, #tpu.memory_space<vmem>>, vector<1x512xf32>
    %21 = vector.broadcast %20 : vector<1x512xf32> to vector<16x512xf32>
    %22 = arith.mulf %19, %21 : vector<16x512xf32>
    %23 = vector.extract_strided_slice %4 {offsets = [0, 511], sizes = [16, 1], strides = [1, 1]} : vector<16x512xf32> to vector<16x1xf32>
    %24 = vector.extract_strided_slice %4 {offsets = [0, 0], sizes = [16, 511], strides = [1, 1]} : vector<16x512xf32> to vector<16x511xf32>
    %25 = tpu.concatenate %23, %24 in 1 : vector<16x1xf32>, vector<16x511xf32> -> vector<16x512xf32>
    %c3 = arith.constant 3 : index
    %c0_9 = arith.constant 0 : index
    %26 = vector.load %arg4[%c3, %c0_9] : memref<8x512xf32, #tpu.memory_space<vmem>>, vector<1x512xf32>
    %27 = vector.broadcast %26 : vector<1x512xf32> to vector<16x512xf32>
    %28 = arith.mulf %25, %27 : vector<16x512xf32>
    %29 = vector.extract_strided_slice %4 {offsets = [0, 1], sizes = [16, 511], strides = [1, 1]} : vector<16x512xf32> to vector<16x511xf32>
    %30 = vector.extract_strided_slice %4 {offsets = [0, 0], sizes = [16, 1], strides = [1, 1]} : vector<16x512xf32> to vector<16x1xf32>
    %31 = tpu.concatenate %29, %30 in 1 : vector<16x511xf32>, vector<16x1xf32> -> vector<16x512xf32>
    %c4 = arith.constant 4 : index
    %c0_10 = arith.constant 0 : index
    %32 = vector.load %arg4[%c4, %c0_10] : memref<8x512xf32, #tpu.memory_space<vmem>>, vector<1x512xf32>
    %33 = vector.broadcast %32 : vector<1x512xf32> to vector<16x512xf32>
    %34 = arith.mulf %31, %33 : vector<16x512xf32>
    %35 = vector.extract_strided_slice %4 {offsets = [0, 15], sizes = [16, 497], strides = [1, 1]} : vector<16x512xf32> to vector<16x497xf32>
    %36 = vector.extract_strided_slice %4 {offsets = [0, 0], sizes = [16, 15], strides = [1, 1]} : vector<16x512xf32> to vector<16x15xf32>
    %37 = tpu.concatenate %35, %36 in 1 : vector<16x497xf32>, vector<16x15xf32> -> vector<16x512xf32>
    %c5 = arith.constant 5 : index
    %c0_11 = arith.constant 0 : index
    %38 = vector.load %arg4[%c5, %c0_11] : memref<8x512xf32, #tpu.memory_space<vmem>>, vector<1x512xf32>
    %39 = vector.broadcast %38 : vector<1x512xf32> to vector<16x512xf32>
    %40 = arith.mulf %37, %39 : vector<16x512xf32>
    %41 = vector.extract_strided_slice %4 {offsets = [0, 16], sizes = [16, 496], strides = [1, 1]} : vector<16x512xf32> to vector<16x496xf32>
    %42 = vector.extract_strided_slice %4 {offsets = [0, 0], sizes = [16, 16], strides = [1, 1]} : vector<16x512xf32> to vector<16x16xf32>
    %43 = tpu.concatenate %41, %42 in 1 : vector<16x496xf32>, vector<16x16xf32> -> vector<16x512xf32>
    %c6 = arith.constant 6 : index
    %c0_12 = arith.constant 0 : index
    %44 = vector.load %arg4[%c6, %c0_12] : memref<8x512xf32, #tpu.memory_space<vmem>>, vector<1x512xf32>
    %45 = vector.broadcast %44 : vector<1x512xf32> to vector<16x512xf32>
    %46 = arith.mulf %43, %45 : vector<16x512xf32>
    %47 = vector.extract_strided_slice %4 {offsets = [0, 17], sizes = [16, 495], strides = [1, 1]} : vector<16x512xf32> to vector<16x495xf32>
    %48 = vector.extract_strided_slice %4 {offsets = [0, 0], sizes = [16, 17], strides = [1, 1]} : vector<16x512xf32> to vector<16x17xf32>
    %49 = tpu.concatenate %47, %48 in 1 : vector<16x495xf32>, vector<16x17xf32> -> vector<16x512xf32>
    %c7 = arith.constant 7 : index
    %c0_13 = arith.constant 0 : index
    %50 = vector.load %arg4[%c7, %c0_13] : memref<8x512xf32, #tpu.memory_space<vmem>>, vector<1x512xf32>
    %51 = vector.broadcast %50 : vector<1x512xf32> to vector<16x512xf32>
    %52 = arith.mulf %49, %51 : vector<16x512xf32>
    %53 = tpu.concatenate %10, %16, %22, %28, %4, %34, %40, %46, %52 in 0 : vector<16x512xf32>, vector<16x512xf32>, vector<16x512xf32>, vector<16x512xf32>, vector<16x512xf32>, vector<16x512xf32>, vector<16x512xf32>, vector<16x512xf32>, vector<16x512xf32> -> vector<144x512xf32>
    %c0_14 = arith.constant 0 : index
    %c0_15 = arith.constant 0 : index
    %54 = vector.load %arg2[%c0_14, %c0_15] : memref<16x144xf32, #tpu.memory_space<vmem>>, vector<16x144xf32>
    %cst = arith.constant dense<0.000000e+00> : vector<16x512xf32>
    %55 = tpu.matmul %54, %53, %cst {dimension_numbers = #tpu.dot_dimension_numbers<[1], [0], [0], [1], [0, 0, 1, 1], [], []>} : vector<16x144xf32>, vector<144x512xf32>, vector<16x512xf32> -> vector<16x512xf32>
    %c0_16 = arith.constant 0 : index
    %c0_17 = arith.constant 0 : index
    %56 = vector.load %arg3[%c0_16, %c0_17] : memref<16x512xf32, #tpu.memory_space<vmem>>, vector<16x512xf32>
    %57 = arith.addf %55, %56 : vector<16x512xf32>
    %cst_18 = arith.constant 0.000000e+00 : f32
    %58 = vector.broadcast %cst_18 : f32 to vector<16x512xf32>
    %59 = arith.maximumf %57, %58 : vector<16x512xf32>
    %60 = vector.extract_strided_slice %59 {offsets = [0, 0], sizes = [16, 256], strides = [1, 1]} : vector<16x512xf32> to vector<16x256xf32>
    %c0_19 = arith.constant 0 : index
    %c0_20 = arith.constant 0 : index
    %c0_21 = arith.constant 0 : index
    %61 = vector.load %arg5[%c0_19, %c0_20, %c0_21] : memref<2x16x256xf32, #tpu.memory_space<vmem>>, vector<1x16x256xf32>
    %62 = vector.shape_cast %61 : vector<1x16x256xf32> to vector<16x256xf32>
    %63 = vector.shape_cast %60 : vector<16x256xf32> to vector<1x16x256xf32>
    tpu.vector_store %arg5[%c0_19, %c0_20, %c0_21], %63 {strides = array<i32>} : memref<2x16x256xf32, #tpu.memory_space<vmem>>, vector<1x16x256xf32>,
    %64 = vector.extract_strided_slice %59 {offsets = [0, 256], sizes = [16, 256], strides = [1, 1]} : vector<16x512xf32> to vector<16x256xf32>
    %c1_22 = arith.constant 1 : index
    %c0_23 = arith.constant 0 : index
    %c0_24 = arith.constant 0 : index
    %65 = vector.load %arg5[%c1_22, %c0_23, %c0_24] : memref<2x16x256xf32, #tpu.memory_space<vmem>>, vector<1x16x256xf32>
    %66 = vector.shape_cast %65 : vector<1x16x256xf32> to vector<16x256xf32>
    %67 = vector.shape_cast %64 : vector<16x256xf32> to vector<1x16x256xf32>
    tpu.vector_store %arg5[%c1_22, %c0_23, %c0_24], %67 {strides = array<i32>} : memref<2x16x256xf32, #tpu.memory_space<vmem>>, vector<1x16x256xf32>,
    return
  }
  func.func @transform_0(%arg0: i32) -> (i32, i32, i32) {
    %c0_i32 = arith.constant 0 : i32
    %c0_i32_0 = arith.constant 0 : i32
    %c0_i32_1 = arith.constant 0 : i32
    return %arg0, %c0_i32, %c0_i32_0 : i32, i32, i32
  }
  func.func @transform_1(%arg0: i32) -> (i32, i32) {
    %c0_i32 = arith.constant 0 : i32
    %c0_i32_0 = arith.constant 0 : i32
    %c0_i32_1 = arith.constant 0 : i32
    return %c0_i32, %c0_i32_0 : i32, i32
  }
  func.func @transform_2(%arg0: i32) -> (i32, i32) {
    %c0_i32 = arith.constant 0 : i32
    %c0_i32_0 = arith.constant 0 : i32
    %c0_i32_1 = arith.constant 0 : i32
    return %c0_i32, %c0_i32_0 : i32, i32
  }
  func.func @transform_3(%arg0: i32) -> (i32, i32) {
    %c0_i32 = arith.constant 0 : i32
    %c0_i32_0 = arith.constant 0 : i32
    %c0_i32_1 = arith.constant 0 : i32
    return %c0_i32, %c0_i32_0 : i32, i32
  }
  func.func @transform_4(%arg0: i32) -> (i32, i32, i32) {
    %c0_i32 = arith.constant 0 : i32
    %c0_i32_0 = arith.constant 0 : i32
    %c0_i32_1 = arith.constant 0 : i32
    return %arg0, %c0_i32, %c0_i32_0 : i32, i32, i32
  }
}

</mosaic_0001>

<bundles_post_ra>
// kernel: _lambda_.1
= control target key start
LH: loop header
LB: loop body
LE: loop exit
PB: predicated region body
PF: predicated region fallthrough
CT: control target
= control target key end

     0   :  { %s1160_s15 = smov 0   ;;  %s1458_s0 = inlined_call_operand.vmem [shape: f32[4,16,256], index: 0, kind: input, shape index: {}]   ;;  %s1459_s1 = inlined_call_operand.vmem [shape: f32[16,144], index: 1, kind: input, shape index: {}]   ;;  %s1460_s2 = inlined_call_operand.vmem [shape: f32[16,512], index: 2, kind: input, shape index: {}]   ;;  %s1461_s3 = inlined_call_operand.vmem [shape: f32[8,512], index: 3, kind: input, shape index: {}]   ;;  %s1462_s4 = inlined_call_operand.vmem [shape: f32[4,16,256], index: 4, kind: output, shape index: {}]  }
   0x1 LB: > { %s997_s16 = sadd.s32 4294967295, %s1125_s15   ;;  %p1001_p0 = scmp.ge.s32.totalorder %s1125_s15, 1  ;;  %s1125_s15 = sphi %s1160_s15, %s14_s15  }
   0x2   : > { %p164_p1 = scmp.lt.s32.totalorder %s1125_s15, 3 }
   0x4   : > { %p165_p2 = pnand %p1001_p0, %p164_p1 }
   0x5   : > { %s1002_s17 = sshll.u32 (!%p165_p2), %s997_s16, 1  ;;  %s1127_s22 = smov (!%p165_p2), 17   ;;  %v260_v8 = vlaneseq (!%p165_p2)  ;;  %v258_v11 = vld [vmem:[%s1461_s3] ss:$8 sm:$0xf] (!%p165_p2)  ;;  %vm241_vm0 = vcmask (!%p165_p2), 138240  }
   0x6   : > { %168 = sbr.rel (%p165_p2) target bundleno = 487 (0x1e7), region = 36  ;;  %p193_p3 = scmp.lt.s32.totalorder (!%p165_p2), %s1002_s17, 3  ;;  %vm306_vm1 = vcmask (!%p165_p2), 130048   ;;  %v751_v16 = vld [vmem:[%s1459_s1 + $0x8] sm:$0xff] (!%p165_p2)  ;;  %vm372_vm2 = vcmask (!%p165_p2), 121856   ;;  %vm438_vm3 = vcmask (!%p165_p2), 7168  }
   0x7   : > { %s1128_s23 = smov (!%p165_p2), 16   ;;  %s1129_s24 = smov (!%p165_p2), 15   ;;  %v261_v9 = vshrl.u32 (!%p165_p2), %v260_v8, 7  ;;  %1019 = vmatprep.mubr.msk.f32.mxu0 (!%p165_p2), %vm306_vm1, %v751_v16  ;;  %1021 = vmatprep.mubr.msk.f32.mxu1 (!%p165_p2), %vm306_vm1, %v751_v16  ;;  %v1012_v46 = vld [vmem:[%s1461_s3 + $0x1] ss:$8 sm:$0xf] (!%p165_p2) }
   0x8   : > { %s1130_s25 = smov (!%p165_p2), 1   ;;  %s1131_s26 = smov (!%p165_p2), 127   ;;  %vm502_vm4 = vcmask (!%p165_p2), 1039360   ;;  %vm568_vm5 = vcmask (!%p165_p2), 924672   ;;  %vm634_vm6 = vcmask (!%p165_p2), 916480   ;;  %vm700_vm7 = vcmask (!%p165_p2), 908288  }
   0x9   : > { %s1132_s27 = smov (!%p165_p2), 113   ;;  %s1133_s28 = smov (!%p165_p2), 112   ;;  %v1252_v10 = vsub.s32 (!%p165_p2), 1, %v261_v9  ;;  %v1261_v14 = vsub.s32 (!%p165_p2), 0, %v261_v9  ;;  %v1271_v21 = vsub.s32 (!%p165_p2), 2, %v261_v9  ;;  %v1278_v25 = vsub.s32 (!%p165_p2), 3, %v261_v9 }
   0xa   : > { %s1134_s29 = smov (!%p165_p2), 111  }
   0xb   : > { %v267_v15 = vrot.slane (!%p165_p2), %v258_v11, %v1252_v10  ;;  %v263_v22 = vrot.slane (!%p165_p2), %v258_v11, %v1261_v14  ;;  %v271_v31 = vrot.slane (!%p165_p2), %v258_v11, %v1271_v21  ;;  %v275_v34 = vrot.slane (!%p165_p2), %v258_v11, %v1278_v25 }
   0xc   : > { %v333_v51 = vrot.slane (!%p165_p2), %v1012_v46, %v1252_v10  ;;  %v329_v58 = vrot.slane (!%p165_p2), %v1012_v46, %v1261_v14  ;;  %v337_v11 = vrot.slane (!%p165_p2), %v1012_v46, %v1271_v21 }
   0xd   : > { %s1464_s17 = smov (!%p193_p3, %s1002_s17), 3 }
   0xe   : > { %s1029_s18 = sshll.u32 %s1464_s17, 5 }
   0xf   : > { %s197_s21 = scalar_lea.vmem %s1458_s0, %s1029_s18  ;;  %s1433_s16 = scalar_lea.vmem %s1462_s4, %s1029_s18 }
  0x10   : > { %v1176_v0 = vld [vmem:[%s197_s21 + $0x10] sm:$0xff]  ;;  %v1178_v1 = vld [vmem:[%s197_s21] sm:$0xff]  ;;  %v1182_v2 = vld [vmem:[%s197_s21 + $0x18] sm:$0xff] }
  0x11   : > { %235 = vrot.lane.b32.xlu1 %v1176_v0, %s1127_s22  ;;  %229 = vrot.lane.b32.xlu0 %v1178_v1, %s1127_s22  ;;  %v1184_v3 = vld [vmem:[%s197_s21 + $0x8] sm:$0xff]  ;;  %v1188_v4 = vld [vmem:[%s197_s21 + $0x38] sm:$0xff] }
  0x12   : > { %v1190_v5 = vld [vmem:[%s197_s21 + $0x28] sm:$0xff]  ;;  %v1194_v6 = vld [vmem:[%s197_s21 + $0x30] sm:$0xff]  ;;  %v1196_v7 = vld [vmem:[%s197_s21 + $0x20] sm:$0xff] }
  0x15   : > { %237 = vrot.lane.b32.xlu1 %v1182_v2, %s1127_s22  ;;  %231 = vrot.lane.b32.xlu0 %v1184_v3, %s1127_s22 }
  0x19   : > { %219 = vrot.lane.b32.xlu1 %v1188_v4, %s1127_s22  ;;  %217 = vrot.lane.b32.xlu0 %v1190_v5, %s1127_s22 }
  0x1d   : > { %239 = vrot.lane.b32.xlu1 %v1194_v6, %s1127_s22  ;;  %233 = vrot.lane.b32.xlu0 %v1196_v7, %s1127_s22 }
  0x21   : > { %296 = vrot.lane.b32.xlu1 %v1184_v3, %s1128_s23  ;;  %294 = vrot.lane.b32.xlu0 %v1178_v1, %s1128_s23 }
  0x25   : > { %302 = vrot.lane.b32.xlu1 %v1182_v2, %s1128_s23  ;;  %300 = vrot.lane.b32.xlu0 %v1176_v0, %s1128_s23 }
  0x29   : > { %290 = vrot.lane.b32.xlu1 %v1188_v4, %s1128_s23  ;;  %288 = vrot.lane.b32.xlu0 %v1190_v5, %s1128_s23 }
  0x2d   : > { %304 = vrot.lane.b32.xlu1 %v1194_v6, %s1128_s23  ;;  %298 = vrot.lane.b32.xlu0 %v1196_v7, %s1128_s23 }
  0x31   : > { %362 = vrot.lane.b32.xlu1 %v1184_v3, %s1129_s24  ;;  %360 = vrot.lane.b32.xlu0 %v1178_v1, %s1129_s24 }
  0x35   : > { %368 = vrot.lane.b32.xlu1 %v1182_v2, %s1129_s24  ;;  %366 = vrot.lane.b32.xlu0 %v1176_v0, %s1129_s24 }
  0x39   : > { %356 = vrot.lane.b32.xlu1 %v1188_v4, %s1129_s24  ;;  %354 = vrot.lane.b32.xlu0 %v1190_v5, %s1129_s24 }
  0x3d   : > { %370 = vrot.lane.b32.xlu1 %v1194_v6, %s1129_s24  ;;  %364 = vrot.lane.b32.xlu0 %v1196_v7, %s1129_s24 }
  0x41   : > { %428 = vrot.lane.b32.xlu1 %v1184_v3, %s1130_s25  ;;  %426 = vrot.lane.b32.xlu0 %v1178_v1, %s1130_s25 }
  0x45   : > { %434 = vrot.lane.b32.xlu1 %v1182_v2, %s1130_s25  ;;  %432 = vrot.lane.b32.xlu0 %v1176_v0, %s1130_s25 }
  0x49   : > { %422 = vrot.lane.b32.xlu1 %v1188_v4, %s1130_s25  ;;  %420 = vrot.lane.b32.xlu0 %v1190_v5, %s1130_s25 }
  0x4d   : > { %436 = vrot.lane.b32.xlu1 %v1194_v6, %s1130_s25  ;;  %430 = vrot.lane.b32.xlu0 %v1196_v7, %s1130_s25 }
  0x51   : > { %490 = vrot.lane.b32.xlu1 %v1196_v7, %s1131_s26  ;;  %488 = vrot.lane.b32.xlu0 %v1184_v3, %s1131_s26 }
  0x55   : > { %498 = vrot.lane.b32.xlu1 %v1194_v6, %s1131_s26  ;;  %496 = vrot.lane.b32.xlu0 %v1182_v2, %s1131_s26 }
  0x59   : > { %492 = vrot.lane.b32.xlu1 %v1190_v5, %s1131_s26  ;;  %486 = vrot.lane.b32.xlu0 %v1178_v1, %s1131_s26 }
  0x5d   : > { %500 = vrot.lane.b32.xlu1 %v1188_v4, %s1131_s26  ;;  %494 = vrot.lane.b32.xlu0 %v1176_v0, %s1131_s26 }
  0x61   : > { %556 = vrot.lane.b32.xlu1 %v1196_v7, %s1132_s27  ;;  %554 = vrot.lane.b32.xlu0 %v1184_v3, %s1132_s27 }
  0x65   : > { %564 = vrot.lane.b32.xlu1 %v1194_v6, %s1132_s27  ;;  %562 = vrot.lane.b32.xlu0 %v1182_v2, %s1132_s27 }
  0x69   : > { %558 = vrot.lane.b32.xlu1 %v1190_v5, %s1132_s27  ;;  %552 = vrot.lane.b32.xlu0 %v1178_v1, %s1132_s27 }
  0x6d   : > { %566 = vrot.lane.b32.xlu1 %v1188_v4, %s1132_s27  ;;  %560 = vrot.lane.b32.xlu0 %v1176_v0, %s1132_s27 }
  0x71   : > { %622 = vrot.lane.b32.xlu1 %v1196_v7, %s1133_s28  ;;  %620 = vrot.lane.b32.xlu0 %v1184_v3, %s1133_s28 }
  0x75   : > { %630 = vrot.lane.b32.xlu1 %v1194_v6, %s1133_s28  ;;  %628 = vrot.lane.b32.xlu0 %v1182_v2, %s1133_s28 }
  0x79   : > { %624 = vrot.lane.b32.xlu1 %v1190_v5, %s1133_s28  ;;  %618 = vrot.lane.b32.xlu0 %v1178_v1, %s1133_s28 }
  0x7d   : > { %632 = vrot.lane.b32.xlu1 %v1188_v4, %s1133_s28  ;;  %626 = vrot.lane.b32.xlu0 %v1176_v0, %s1133_s28 }
  0x81   : > { %688 = vrot.lane.b32.xlu1 %v1196_v7, %s1134_s29  ;;  %686 = vrot.lane.b32.xlu0 %v1184_v3, %s1134_s29 }
  0x83   : > { %v236_v12 = vpop.permute.xlu1 %235  ;;  %v230_v13 = vpop.permute.xlu0 %229 }
  0x85   : > { %696 = vrot.lane.b32.xlu1 %v1194_v6, %s1134_s29  ;;  %694 = vrot.lane.b32.xlu0 %v1182_v2, %s1134_s29 }
  0x87   : > { %v238_v17 = vpop.permute.xlu1 %237  ;;  %v232_v18 = vpop.permute.xlu0 %231 }
  0x88   : > { %v245_v19 = vsel %vm241_vm0, %v236_v12, %v238_v17  ;;  %v242_v20 = vsel %vm241_vm0, %v230_v13, %v232_v18 }
  0x89   : > { %690 = vrot.lane.b32.xlu1 %v1190_v5, %s1134_s29  ;;  %684 = vrot.lane.b32.xlu0 %v1178_v1, %s1134_s29  ;;  %v281_v23 = vmul.f32 %v267_v15, %v242_v20  ;;  %v285_v24 = vmul.f32 %v267_v15, %v245_v19 }
  0x8b   : > { %v220_v26 = vpop.permute.xlu1 %219  ;;  %v218_v27 = vpop.permute.xlu0 %217  ;;  %v1031_v28 = vpack.c.bf16 %v285_v24, %v281_v23 }
  0x8c   : > { %v257_v29 = vsel %vm241_vm0, %v220_v26, %v236_v12  ;;  %v256_v30 = vsel %vm241_vm0, %v218_v27, %v230_v13  ;;  %v341_v12 = vrot.slane %v1012_v46, %v1278_v25 }
  0x8d   : > { %v284_v32 = vmul.f32 %v263_v22, %v257_v29  ;;  %v280_v33 = vmul.f32 %v263_v22, %v256_v30  ;;  %698 = vrot.lane.b32.xlu1 %v1188_v4, %s1134_s29  ;;  %692 = vrot.lane.b32.xlu0 %v1176_v0, %s1134_s29 }
  0x8e   : > { %1032 = vmatprep.subr.bf16.mxu0 %v1031_v28 }
  0x8f   : > { %v240_v35 = vpop.permute.xlu1 %239  ;;  %v234_v36 = vpop.permute.xlu0 %233  ;;  %v1033_v37 = vpack.c.bf16 %v284_v32, %v280_v33 }
  0x90   : > { %v246_v38 = vsel %vm241_vm0, %v238_v17, %v240_v35  ;;  %v247_v39 = vsel %vm241_vm0, %v240_v35, %v220_v26  ;;  %v243_v40 = vsel %vm241_vm0, %v232_v18, %v234_v36  ;;  %v244_v41 = vsel %vm241_vm0, %v234_v36, %v218_v27  ;;  %v1013_v27 = vld [vmem:[%s1461_s3 + $0x2] ss:$8 sm:$0xf] }
  0x91   : > { %v286_v42 = vmul.f32 %v271_v31, %v246_v38  ;;  %v282_v43 = vmul.f32 %v271_v31, %v243_v40  ;;  %1034 = vmatpush1.bf16.msra.mxu0 %v1033_v37  ;;  %v283_v44 = vmul.f32 %v275_v34, %v244_v41  ;;  %v287_v45 = vmul.f32 %v275_v34, %v247_v39 }
  0x92   : > { %v399_v32 = vrot.slane %v1013_v27, %v1252_v10  ;;  %v395_v39 = vrot.slane %v1013_v27, %v1261_v14 }
  0x93   : > { %v297_v47 = vpop.permute.xlu1 %296  ;;  %v295_v48 = vpop.permute.xlu0 %294  ;;  %v1067_v49 = vpack.c.bf16 %v287_v45, %v283_v44  ;;  %v1069_v50 = vpack.c.bf16 %v286_v42, %v282_v43 }
  0x94   : > { %v307_v52 = vsel %vm306_vm1, %v295_v48, %v297_v47 }
  0x95   : > { %1068 = vmatprep.subr.bf16.mxu1 %v1067_v49  ;;  %v347_v56 = vmul.f32 %v333_v51, %v307_v52 }
  0x96   : > { %1070 = vmatpush1.bf16.msra.mxu1 %v1069_v50 }
  0x97   : > { %v303_v53 = vpop.permute.xlu1 %302  ;;  %v301_v54 = vpop.permute.xlu0 %300 }
  0x98   : > { %v310_v55 = vsel %vm306_vm1, %v301_v54, %v303_v53 }
  0x99   : > { %v351_v57 = vmul.f32 %v333_v51, %v310_v55 }
  0x9b   : > { %v291_v59 = vpop.permute.xlu1 %290  ;;  %v289_v60 = vpop.permute.xlu0 %288  ;;  %v1035_v61 = vpack.c.bf16 %v351_v57, %v347_v56 }
  0x9c   : > { %v322_v62 = vsel %vm306_vm1, %v291_v59, %v301_v54  ;;  %v321_v63 = vsel %vm306_vm1, %v289_v60, %v295_v48  ;;  %v407_v48 = vrot.slane %v1013_v27, %v1278_v25 }
  0x9d   : > { %v350_v8 = vmul.f32 %v329_v58, %v322_v62  ;;  %v346_v9 = vmul.f32 %v329_v58, %v321_v63  ;;  %1036 = vmatprep.subr.bf16.mxu0 %v1035_v61 }
  0x9f   : > { %v305_v13 = vpop.permute.xlu1 %304  ;;  %v299_v15 = vpop.permute.xlu0 %298  ;;  %v1037_v16 = vpack.c.bf16 %v350_v8, %v346_v9 }
  0xa0   : > { %v311_v17 = vsel %vm306_vm1, %v303_v53, %v305_v13  ;;  %v312_v18 = vsel %vm306_vm1, %v305_v13, %v291_v59  ;;  %v308_v19 = vsel %vm306_vm1, %v297_v47, %v299_v15  ;;  %v309_v20 = vsel %vm306_vm1, %v299_v15, %v289_v60  ;;  %v1014_v60 = vld [vmem:[%s1461_s3 + $0x3] ss:$8 sm:$0xf] }
  0xa1   : > { %v352_v22 = vmul.f32 %v337_v11, %v311_v17  ;;  %v353_v23 = vmul.f32 %v341_v12, %v312_v18  ;;  %v348_v24 = vmul.f32 %v337_v11, %v308_v19  ;;  %v349_v26 = vmul.f32 %v341_v12, %v309_v20  ;;  %1038 = vmatpush1.bf16.msra.mxu0 %v1037_v16 }
  0xa2   : > { %v403_v47 = vrot.slane %v1013_v27, %v1271_v21  ;;  %v465_v9 = vrot.slane %v1014_v60, %v1252_v10  ;;  %v461_v18 = vrot.slane %v1014_v60, %v1261_v14 }
  0xa3   : > { %v363_v28 = vpop.permute.xlu1 %362  ;;  %v361_v29 = vpop.permute.xlu0 %360  ;;  %v1071_v30 = vpack.c.bf16 %v353_v23, %v349_v26  ;;  %v1073_v31 = vpack.c.bf16 %v352_v22, %v348_v24 }
  0xa4   : > { %v373_v33 = vsel %vm372_vm2, %v361_v29, %v363_v28 }
  0xa5   : > { %1072 = vmatprep.subr.bf16.mxu1 %v1071_v30  ;;  %v413_v37 = vmul.f32 %v399_v32, %v373_v33  ;;  %v1047_v30 = vpack.c.bf16 %v1182_v2, %v1184_v3  ;;  %v1015_v2 = vld [vmem:[%s1461_s3 + $0x4] ss:$8 sm:$0xf] }
  0xa6   : > { %1074 = vmatpush1.bf16.msra.mxu1 %v1073_v31 }
  0xa7   : > { %v369_v34 = vpop.permute.xlu1 %368  ;;  %v367_v35 = vpop.permute.xlu0 %366 }
  0xa8   : > { %v376_v36 = vsel %vm372_vm2, %v367_v35, %v369_v34 }
  0xa9   : > { %v417_v38 = vmul.f32 %v399_v32, %v376_v36 }
  0xab   : > { %v357_v40 = vpop.permute.xlu1 %356  ;;  %v355_v41 = vpop.permute.xlu0 %354  ;;  %v1039_v42 = vpack.c.bf16 %v417_v38, %v413_v37 }
  0xac   : > { %v388_v43 = vsel %vm372_vm2, %v357_v40, %v367_v35  ;;  %v387_v44 = vsel %vm372_vm2, %v355_v41, %v361_v29  ;;  %v473_v29 = vrot.slane %v1014_v60, %v1278_v25 }
  0xad   : > { %v416_v45 = vmul.f32 %v395_v39, %v388_v43  ;;  %v412_v46 = vmul.f32 %v395_v39, %v387_v44  ;;  %1040 = vmatprep.subr.bf16.mxu0 %v1039_v42  ;;  %v1083_v44 = vpack.c.bf16 %v1188_v4, %v1190_v5  ;;  %v535_v4 = vrot.slane %v1015_v2, %v1271_v21 }
  0xaf   : > { %v371_v49 = vpop.permute.xlu1 %370  ;;  %v365_v50 = vpop.permute.xlu0 %364  ;;  %v1041_v51 = vpack.c.bf16 %v416_v45, %v412_v46  ;;  %v531_v45 = vrot.slane %v1015_v2, %v1252_v10 }
  0xb0   : > { %v377_v52 = vsel %vm372_vm2, %v369_v34, %v371_v49  ;;  %v378_v53 = vsel %vm372_vm2, %v371_v49, %v357_v40  ;;  %v374_v54 = vsel %vm372_vm2, %v363_v28, %v365_v50  ;;  %v375_v55 = vsel %vm372_vm2, %v365_v50, %v355_v41 }
  0xb1   : > { %v418_v56 = vmul.f32 %v403_v47, %v377_v52  ;;  %v419_v57 = vmul.f32 %v407_v48, %v378_v53  ;;  %v414_v58 = vmul.f32 %v403_v47, %v374_v54  ;;  %v415_v59 = vmul.f32 %v407_v48, %v375_v55  ;;  %1042 = vmatpush1.bf16.msra.mxu0 %v1041_v51 }
  0xb2   : > { %v469_v28 = vrot.slane %v1014_v60, %v1271_v21  ;;  %v1049_v34 = vpack.c.bf16 %v1176_v0, %v1178_v1  ;;  %v1085_v47 = vpack.c.bf16 %v1194_v6, %v1196_v7 }
  0xb3   : > { %v429_v61 = vpop.permute.xlu1 %428  ;;  %v427_v62 = vpop.permute.xlu0 %426  ;;  %v1075_v63 = vpack.c.bf16 %v419_v57, %v415_v59  ;;  %v1077_v8 = vpack.c.bf16 %v418_v56, %v414_v58  ;;  %v527_v56 = vrot.slane %v1015_v2, %v1261_v14  ;;  %v539_v57 = vrot.slane %v1015_v2, %v1278_v25 }
  0xb4   : > { %v439_v11 = vsel %vm438_vm3, %v427_v62, %v429_v61 }
  0xb5   : > { %1076 = vmatprep.subr.bf16.mxu1 %v1075_v63  ;;  %v479_v16 = vmul.f32 %v465_v9, %v439_v11 }
  0xb6   : > { %1078 = vmatpush1.bf16.msra.mxu1 %v1077_v8 }
  0xb7   : > { %v435_v12 = vpop.permute.xlu1 %434  ;;  %v433_v13 = vpop.permute.xlu0 %432 }
  0xb8   : > { %v442_v15 = vsel %vm438_vm3, %v433_v13, %v435_v12 }
  0xb9   : > { %v483_v17 = vmul.f32 %v465_v9, %v442_v15  ;;  %v1016_v15 = vld [vmem:[%s1461_s3 + $0x5] ss:$8 sm:$0xf] }
  0xbb   : > { %v423_v19 = vpop.permute.xlu1 %422  ;;  %v421_v20 = vpop.permute.xlu0 %420  ;;  %v1043_v22 = vpack.c.bf16 %v483_v17, %v479_v16 }
  0xbc   : > { %v454_v23 = vsel %vm438_vm3, %v423_v19, %v433_v13  ;;  %v453_v24 = vsel %vm438_vm3, %v421_v20, %v427_v62 }
  0xbd   : > { %v482_v26 = vmul.f32 %v461_v18, %v454_v23  ;;  %v478_v27 = vmul.f32 %v461_v18, %v453_v24  ;;  %1044 = vmatprep.subr.bf16.mxu0 %v1043_v22  ;;  %v597_v22 = vrot.slane %v1016_v15, %v1252_v10 }
  0xbf   : > { %v437_v31 = vpop.permute.xlu1 %436  ;;  %v431_v32 = vpop.permute.xlu0 %430  ;;  %v1045_v33 = vpack.c.bf16 %v482_v26, %v478_v27 }
  0xc0   : > { %v443_v35 = vsel %vm438_vm3, %v435_v12, %v437_v31  ;;  %v444_v36 = vsel %vm438_vm3, %v437_v31, %v423_v19  ;;  %v440_v37 = vsel %vm438_vm3, %v429_v61, %v431_v32  ;;  %v441_v38 = vsel %vm438_vm3, %v431_v32, %v421_v20 }
  0xc1   : > { %v484_v39 = vmul.f32 %v469_v28, %v443_v35  ;;  %v485_v40 = vmul.f32 %v473_v29, %v444_v36  ;;  %v480_v41 = vmul.f32 %v469_v28, %v440_v37  ;;  %v481_v42 = vmul.f32 %v473_v29, %v441_v38  ;;  %1046 = vmatpush1.bf16.msra.mxu0 %v1045_v33 }
  0xc2   : > { %1048 = vmatprep.subr.bf16.mxu0 %v1047_v30  ;;  %v601_v30 = vrot.slane %v1016_v15, %v1271_v21  ;;  %v593_v35 = vrot.slane %v1016_v15, %v1261_v14  ;;  %v605_v36 = vrot.slane %v1016_v15, %v1278_v25 }
  0xc3   : > { %v491_v3 = vpop.permute.xlu1 %490  ;;  %v489_v0 = vpop.permute.xlu0 %488  ;;  %v1079_v1 = vpack.c.bf16 %v485_v40, %v481_v42  ;;  %v1081_v43 = vpack.c.bf16 %v484_v39, %v480_v41 }
  0xc4   : > { %v504_v46 = vsel %vm502_vm4, %v489_v0, %v491_v3 }
  0xc5   : > { %1080 = vmatprep.subr.bf16.mxu1 %v1079_v1  ;;  %1050 = vmatpush1.bf16.msra.mxu0 %v1049_v34  ;;  %v545_v51 = vmul.f32 %v531_v45, %v504_v46  ;;  %v1017_v46 = vld [vmem:[%s1461_s3 + $0x6] ss:$8 sm:$0xf] }
  0xc6   : > { %1082 = vmatpush1.bf16.msra.mxu1 %v1081_v43 }
  0xc7   : > { %v499_v48 = vpop.permute.xlu1 %498  ;;  %v497_v49 = vpop.permute.xlu0 %496  ;;  %1084 = vmatprep.subr.bf16.mxu1 %v1083_v44 }
  0xc8   : > { %v507_v50 = vsel %vm502_vm4, %v497_v49, %v499_v48 }
  0xc9   : > { %v549_v52 = vmul.f32 %v531_v45, %v507_v50 }
  0xca   : > { %1086 = vmatpush1.bf16.msra.mxu1 %v1085_v47 }
  0xcb   : > { %v493_v5 = vpop.permute.xlu1 %492  ;;  %v487_v53 = vpop.permute.xlu0 %486  ;;  %v1051_v54 = vpack.c.bf16 %v549_v52, %v545_v51  ;;  %v663_v52 = vrot.slane %v1017_v46, %v1252_v10 }
  0xcc   : > { %v505_v55 = vsel %vm502_vm4, %v491_v3, %v493_v5  ;;  %v503_v6 = vsel %vm502_vm4, %v487_v53, %v489_v0  ;;  %v519_v7 = vsel %vm502_vm4, %v493_v5, %v487_v53 }
  0xcd   : > { %1052 = vmatprep.subr.bf16.mxu0 %v1051_v54  ;;  %v546_v58 = vmul.f32 %v535_v4, %v505_v55  ;;  %v544_v61 = vmul.f32 %v527_v56, %v503_v6  ;;  %v547_v9 = vmul.f32 %v539_v57, %v519_v7 }
  0xcf   : > { %v501_v59 = vpop.permute.xlu1 %500  ;;  %v495_v60 = vpop.permute.xlu0 %494 }
  0xd0   : > { %v508_v62 = vsel %vm502_vm4, %v499_v48, %v501_v59  ;;  %v506_v63 = vsel %vm502_vm4, %v495_v60, %v497_v49  ;;  %v520_v8 = vsel %vm502_vm4, %v501_v59, %v495_v60  ;;  %v659_v60 = vrot.slane %v1017_v46, %v1261_v14 }
  0xd1   : > { %v550_v11 = vmul.f32 %v535_v4, %v508_v62  ;;  %v548_v12 = vmul.f32 %v527_v56, %v506_v63  ;;  %v551_v13 = vmul.f32 %v539_v57, %v520_v8  ;;  %v667_v57 = vrot.slane %v1017_v46, %v1271_v21 }
  0xd3   : > { %v557_v16 = vpop.permute.xlu1 %556  ;;  %v555_v17 = vpop.permute.xlu0 %554  ;;  %v1053_v18 = vpack.c.bf16 %v548_v12, %v544_v61  ;;  %v1087_v19 = vpack.c.bf16 %v551_v13, %v547_v9  ;;  %v1089_v20 = vpack.c.bf16 %v550_v11, %v546_v58  ;;  %v671_v61 = vrot.slane %v1017_v46, %v1278_v25 }
  0xd4   : > { %v570_v23 = vsel %vm568_vm5, %v555_v17, %v557_v16 }
  0xd5   : > { %1054 = vmatpush1.bf16.msra.mxu0 %v1053_v18  ;;  %1088 = vmatprep.subr.bf16.mxu1 %v1087_v19  ;;  %v611_v28 = vmul.f32 %v597_v22, %v570_v23 }
  0xd6   : > { %1090 = vmatpush1.bf16.msra.mxu1 %v1089_v20 }
  0xd7   : > { %v565_v24 = vpop.permute.xlu1 %564  ;;  %v563_v26 = vpop.permute.xlu0 %562 }
  0xd8   : > { %v573_v27 = vsel %vm568_vm5, %v563_v26, %v565_v24 }
  0xd9   : > { %v615_v29 = vmul.f32 %v597_v22, %v573_v27  ;;  %v1018_v22 = vld [vmem:[%s1461_s3 + $0x7] ss:$8 sm:$0xf] }
  0xdb   : > { %v559_v31 = vpop.permute.xlu1 %558  ;;  %v553_v32 = vpop.permute.xlu0 %552  ;;  %v1055_v33 = vpack.c.bf16 %v615_v29, %v611_v28  ;;  %v729_v29 = vrot.slane %v1018_v22, %v1252_v10  ;;  %v725_v10 = vrot.slane %v1018_v22, %v1261_v14 }
  0xdc   : > { %v571_v34 = vsel %vm568_vm5, %v557_v16, %v559_v31  ;;  %v569_v37 = vsel %vm568_vm5, %v553_v32, %v555_v17  ;;  %v585_v38 = vsel %vm568_vm5, %v559_v31, %v553_v32 }
  0xdd   : > { %1056 = vmatprep.subr.bf16.mxu0 %v1055_v33  ;;  %v612_v39 = vmul.f32 %v601_v30, %v571_v34  ;;  %v610_v42 = vmul.f32 %v593_v35, %v569_v37  ;;  %v613_v1 = vmul.f32 %v605_v36, %v585_v38 }
  0xdf   : > { %v567_v40 = vpop.permute.xlu1 %566  ;;  %v561_v41 = vpop.permute.xlu0 %560 }
  0xe0   : > { %v574_v2 = vsel %vm568_vm5, %v565_v24, %v567_v40  ;;  %v572_v3 = vsel %vm568_vm5, %v561_v41, %v563_v26  ;;  %v586_v0 = vsel %vm568_vm5, %v567_v40, %v561_v41  ;;  %v737_v41 = vrot.slane %v1018_v22, %v1278_v25 }
  0xe1   : > { %v616_v43 = vmul.f32 %v601_v30, %v574_v2  ;;  %v614_v44 = vmul.f32 %v593_v35, %v572_v3  ;;  %v617_v45 = vmul.f32 %v605_v36, %v586_v0  ;;  %v733_v36 = vrot.slane %v1018_v22, %v1271_v21 }
  0xe3   : > { %v623_v47 = vpop.permute.xlu1 %622  ;;  %v621_v48 = vpop.permute.xlu0 %620  ;;  %v1057_v49 = vpack.c.bf16 %v614_v44, %v610_v42  ;;  %v1091_v50 = vpack.c.bf16 %v617_v45, %v613_v1  ;;  %v1093_v51 = vpack.c.bf16 %v616_v43, %v612_v39 }
  0xe4   : > { %v636_v4 = vsel %vm634_vm6, %v621_v48, %v623_v47 }
  0xe5   : > { %1058 = vmatpush1.bf16.msra.mxu0 %v1057_v49  ;;  %1092 = vmatprep.subr.bf16.mxu1 %v1091_v50  ;;  %v677_v55 = vmul.f32 %v663_v52, %v636_v4  ;;  %v752_v4 = vld [vmem:[%s1459_s1 + $0x10] sm:$0xff] }
  0xe6   : > { %1094 = vmatpush1.bf16.msra.mxu1 %v1093_v51  ;;  %v750_v51 = vld [vmem:[%s1459_s1] sm:$0xff] }
  0xe7   : > { %v631_v5 = vpop.permute.xlu1 %630  ;;  %v629_v53 = vpop.permute.xlu0 %628 }
  0xe8   : > { %v639_v54 = vsel %vm634_vm6, %v629_v53, %v631_v5 }
  0xe9   : > { %v681_v56 = vmul.f32 %v663_v52, %v639_v54  ;;  %v753_v52 = vld [vmem:[%s1459_s1 + $0x18] sm:$0xff]  ;;  %v756_v54 = vld [vmem:[%s1460_s2 + $0x10] sm:$0xff] }
  0xeb   : > { %v625_v6 = vpop.permute.xlu1 %624  ;;  %v619_v7 = vpop.permute.xlu0 %618  ;;  %v1059_v58 = vpack.c.bf16 %v681_v56, %v677_v55  ;;  %v757_v56 = vld [vmem:[%s1460_s2 + $0x18] sm:$0xff] }
  0xec   : > { %v637_v59 = vsel %vm634_vm6, %v623_v47, %v625_v6  ;;  %v635_v62 = vsel %vm634_vm6, %v619_v7, %v621_v48  ;;  %v651_v63 = vsel %vm634_vm6, %v625_v6, %v619_v7 }
  0xed   : > { %1060 = vmatprep.subr.bf16.mxu0 %v1059_v58  ;;  %v678_v8 = vmul.f32 %v667_v57, %v637_v59  ;;  %v676_v12 = vmul.f32 %v659_v60, %v635_v62  ;;  %v679_v17 = vmul.f32 %v671_v61, %v651_v63 }
  0xef   : > { %v633_v9 = vpop.permute.xlu1 %632  ;;  %v627_v11 = vpop.permute.xlu0 %626 }
  0xf0   : > { %v640_v13 = vsel %vm634_vm6, %v631_v5, %v633_v9  ;;  %v638_v15 = vsel %vm634_vm6, %v627_v11, %v629_v53  ;;  %v652_v16 = vsel %vm634_vm6, %v633_v9, %v627_v11  ;;  %v754_v5 = vld [vmem:[%s1460_s2] sm:$0xff]  ;;  %v755_v53 = vld [vmem:[%s1460_s2 + $0x8] sm:$0xff]  ;;  %v760_v9 = vld [vmem:[%s1460_s2 + $0x30] sm:$0xff] }
  0xf1   : > { %v682_v18 = vmul.f32 %v667_v57, %v640_v13  ;;  %v680_v19 = vmul.f32 %v659_v60, %v638_v15  ;;  %v683_v20 = vmul.f32 %v671_v61, %v652_v16  ;;  %v758_v61 = vld [vmem:[%s1460_s2 + $0x20] sm:$0xff]  ;;  %v761_v15 = vld [vmem:[%s1460_s2 + $0x38] sm:$0xff] }
  0xf3   : > { %v689_v23 = vpop.permute.xlu1 %688  ;;  %v687_v24 = vpop.permute.xlu0 %686  ;;  %v1061_v26 = vpack.c.bf16 %v680_v19, %v676_v12  ;;  %v1095_v27 = vpack.c.bf16 %v683_v20, %v679_v17  ;;  %v1097_v28 = vpack.c.bf16 %v682_v18, %v678_v8  ;;  %v759_v8 = vld [vmem:[%s1460_s2 + $0x28] sm:$0xff] }
  0xf4   : > { %v702_v30 = vsel %vm700_vm7, %v687_v24, %v689_v23 }
  0xf5   : > { %1062 = vmatpush1.bf16.msra.mxu0 %v1061_v26  ;;  %1096 = vmatprep.subr.bf16.mxu1 %v1095_v27  ;;  %v743_v34 = vmul.f32 %v729_v29, %v702_v30 }
  0xf6   : > { %1098 = vmatpush1.bf16.msra.mxu1 %v1097_v28 }
  0xf7   : > { %v697_v31 = vpop.permute.xlu1 %696  ;;  %v695_v32 = vpop.permute.xlu0 %694 }
  0xf8   : > { %v705_v33 = vsel %vm700_vm7, %v695_v32, %v697_v31 }
  0xf9   : > { %v747_v35 = vmul.f32 %v729_v29, %v705_v33 }
  0xfb   : > { %v691_v37 = vpop.permute.xlu1 %690  ;;  %v685_v38 = vpop.permute.xlu0 %684  ;;  %v1063_v39 = vpack.c.bf16 %v747_v35, %v743_v34 }
  0xfc   : > { %v703_v40 = vsel %vm700_vm7, %v689_v23, %v691_v37  ;;  %v701_v42 = vsel %vm700_vm7, %v685_v38, %v687_v24  ;;  %v717_v2 = vsel %vm700_vm7, %v691_v37, %v685_v38 }
  0xfd   : > { %1064 = vmatprep.subr.bf16.mxu0 %v1063_v39  ;;  %v744_v3 = vmul.f32 %v733_v36, %v703_v40  ;;  %v742_v43 = vmul.f32 %v725_v10, %v701_v42  ;;  %v745_v46 = vmul.f32 %v737_v41, %v717_v2 }
  0xff   : > { %v699_v0 = vpop.permute.xlu1 %698  ;;  %v693_v1 = vpop.permute.xlu0 %692 }
 0x100   : > { %v706_v21 = vsel %vm700_vm7, %v697_v31, %v699_v0  ;;  %v704_v44 = vsel %vm700_vm7, %v693_v1, %v695_v32  ;;  %v718_v45 = vsel %vm700_vm7, %v699_v0, %v693_v1 }
 0x101   : > { %v748_v47 = vmul.f32 %v733_v36, %v706_v21  ;;  %v746_v14 = vmul.f32 %v725_v10, %v704_v44  ;;  %v749_v48 = vmul.f32 %v737_v41, %v718_v45 }
 0x103   : > { %v1065_v25 = vpack.c.bf16 %v746_v14, %v742_v43  ;;  %v1099_v49 = vpack.c.bf16 %v749_v48, %v745_v46  ;;  %v1101_v50 = vpack.c.bf16 %v748_v47, %v744_v3 }
 0x105   : > { %1066 = vmatpush1.bf16.msra.mxu0 %v1065_v25  ;;  %1100 = vmatprep.subr.bf16.mxu1 %v1099_v49 }
 0x106   : > { %1102 = vmatpush1.bf16.msra.mxu1 %v1101_v50 }
 0x108   : > { %833 = vmatmul.mubr.f32.vlgmr.msra.gmra.mrb[0].mxu0 %v750_v51 }
 0x109   : > { %910 = vmatmul.mubr.f32.vlgmr.msra.gmra.mrb[0].mxu1 %v750_v51  ;;  %1020 = vmatprep.mubr.msk.f32.mxu0 %vm306_vm1, %v753_v52 }
 0x10a   : > { %1022 = vmatprep.mubr.msk.f32.mxu1 %vm306_vm1, %v753_v52 }
 0x10c   : > { %839 = vmatmul.mubr.f32.gmra.mrb[2].mxu0 %v752_v4 }
 0x10d   : > { %916 = vmatmul.mubr.f32.gmra.mrb[2].mxu1 %v752_v4 }
 0x1db   : > { %v834_v55 = vpop.f32.mrb[0].mxu0 }
 0x1dc   : > { %v835_v57 = vadd.f32 %v834_v55, %v754_v5  ;;  %v836_v6 = vpop.f32.mrb[1].mxu0  ;;  %v911_v7 = vpop.f32.mrb[0].mxu1 }
 0x1dd   : > { %v837_v58 = vadd.f32 %v836_v6, %v755_v53  ;;  %v912_v59 = vadd.f32 %v911_v7, %v756_v54  ;;  %v913_v60 = vpop.f32.mrb[1].mxu1 }
 0x1de   : > { %v922_v62 = vmax.f32 %v835_v57, 0.0  ;;  %v914_v63 = vadd.f32 %v913_v60, %v757_v56 }
 0x1df   : > { %v923_v11 = vmax.f32 %v837_v58, 0.0  ;;  %v924_v12 = vmax.f32 %v912_v59, 0.0  ;;  %v840_v13 = vpop.f32.mrb[2].mxu0 }
 0x1e0   : > { %930 = vst [vmem:[%s1433_s16] sm:$0xff] %v922_v62  ;;  %v925_v16 = vmax.f32 %v914_v63, 0.0  ;;  %v841_v17 = vadd.f32 %v840_v13, %v758_v61  ;;  %v842_v18 = vpop.f32.mrb[3].mxu0  ;;  %v917_v19 = vpop.f32.mrb[2].mxu1 }
 0x1e1   : > { %931 = vst [vmem:[%s1433_s16 + $0x8] sm:$0xff] %v923_v11  ;;  %1023 = vst [vmem:[%s1433_s16 + $0x20] sm:$0xff] %v924_v12  ;;  %v843_v20 = vadd.f32 %v842_v18, %v759_v8  ;;  %v918_v22 = vadd.f32 %v917_v19, %v760_v9  ;;  %v919_v23 = vpop.f32.mrb[3].mxu1 }
 0x1e2   : > { %1024 = vst [vmem:[%s1433_s16 + $0x28] sm:$0xff] %v925_v16  ;;  %v926_v24 = vmax.f32 %v841_v17, 0.0  ;;  %v920_v26 = vadd.f32 %v919_v23, %v761_v15 }
 0x1e3   : > { %v927_v27 = vmax.f32 %v843_v20, 0.0  ;;  %v928_v28 = vmax.f32 %v918_v22, 0.0 }
 0x1e4   : > { %932 = vst [vmem:[%s1433_s16 + $0x10] sm:$0xff] %v926_v24  ;;  %v929_v29 = vmax.f32 %v920_v26, 0.0 }
 0x1e5   : > { %933 = vst [vmem:[%s1433_s16 + $0x18] sm:$0xff] %v927_v27  ;;  %1025 = vst [vmem:[%s1433_s16 + $0x30] sm:$0xff] %v928_v28 }
 0x1e6   : > { %1026 = vst [vmem:[%s1433_s16 + $0x38] sm:$0xff] %v929_v29 }
 0x1e7 PF: > { %s14_s15 = sadd.s32 1, %s1125_s15  }
 0x1e8   : > { %p11_p4 = scmp.ge.s32.totalorder %s14_s15, 4  }
 0x1ea   :  { %13 = sbr.rel (!%p11_p4) target bundleno = 1 (0x1), region = 75 }

</bundles_post_ra>
